<compile_context>
chip_gen: v7x
topology: tpu7x:2x2x1
jax: 0.10.0
libtpu: 0.0.40
codegen_flags: <defaults>
</compile_context>

<pallas_src>
import functools

import jax
import jax.numpy as jnp
from jax import lax
from jax.experimental import pallas as pl
from jax.experimental.pallas import tpu as pltpu

_EPS = 1e-12  # torch.nn.functional.normalize default eps


def _round_up(x, m):
    return ((x + m - 1) // m) * m


def _maybe_pad(x, target_shape, dtype):
    """Cast / zero-pad only when actually needed (skips extra HBM copies)."""
    if x.dtype != dtype:
        x = x.astype(dtype)
    if tuple(x.shape) != tuple(target_shape):
        x = jnp.pad(x, tuple((0, t - s) for s, t in zip(x.shape, target_shape)))
    return x


def _vmem_capacity_bytes():
    try:
        return int(pltpu.get_tpu_info().vmem_capacity_bytes)
    except Exception:
        return 128 * 1024 * 1024  # v5e/v6e; v7x reports 64 MiB per TensorCore


def _vmem_limit_bytes(need_bytes):
    cap = _vmem_capacity_bytes()
    ceiling = max(cap - (16 << 20), 32 << 20)   # leave headroom for compiler scratch
    return int(min(max(need_bytes + (8 << 20), 32 << 20), ceiling))


def _row_l2_normalize(x):
    # x / max(||x||, eps)  ==  x * rsqrt(max(||x||^2, eps^2))   (EUP rsqrt)
    sumsq = jnp.sum(x * x, axis=-1, keepdims=True)
    return x * lax.rsqrt(jnp.maximum(sumsq, _EPS * _EPS))


def _row_degree_normalize(m):
    # norm_g: deg = sum(m, 1); deg = threshold(deg, 0, 1); m / deg
    deg = jnp.sum(m, axis=-1, keepdims=True)
    deg = jnp.where(deg > 0.0, deg, 1.0)
    return m * (1.0 / deg)  # one per-row reciprocal + cheap broadcast muls


def project_kernel(h_ref, w_ref, hfc_ref, *, compute_dtype, precision):
    """h_fc = l2norm(relu(l2norm(h) @ w.T)) for one (TM, D) row slab."""
    h = _row_l2_normalize(h_ref[...].astype(jnp.float32))
    # w_ref is already in compute_dtype (pre-cast once in the wrapper).
    h_fc = lax.dot_general(
        h.astype(compute_dtype), w_ref[...],
        dimension_numbers=(((1,), (1,)), ((), ())),
        preferred_element_type=jnp.float32,
        precision=precision)
    h_fc = jnp.maximum(h_fc, 0.0)
    h_fc = _row_l2_normalize(h_fc)
    hfc_ref[...] = h_fc.astype(hfc_ref.dtype)


def refine_kernel(alpha_ref, g_ref, hfc_ref, g_out_ref, newg_out_ref, *, tm,
                  precision):
    """One (TM, N) slab of: new_g = hfc @ hfc.T (diag=0, degree-norm), g blend."""
    i = pl.program_id(0)
    row_off = pl.multiple_of(i * tm, tm)
    alpha = alpha_ref[0]

    # g = norm_g(g)
    g = _row_degree_normalize(g_ref[...].astype(jnp.float32))

    # Row slab of h_fc is a zero-cost, tm-aligned view of the resident buffer
    # (no duplicated input / extra DMA stream).
    hfc_rows = hfc_ref[pl.ds(row_off, tm), :]

    # new_g rows = h_fc_rows @ h_fc_all.T  (native RHS transpose via dot_general)
    new_g = lax.dot_general(
        hfc_rows, hfc_ref[...],
        dimension_numbers=(((1,), (1,)), ((), ())),
        preferred_element_type=jnp.float32,
        precision=precision)                               # (TM, N_pad) f32

    # Zero the diagonal entries that fall inside this row slab (iota mask --
    # the standard, safely-lowering idiom for a dynamic diagonal).
    n_cols = new_g.shape[1]
    col_ids = lax.broadcasted_iota(jnp.int32, (tm, n_cols), 1)
    diag_col = lax.broadcasted_iota(jnp.int32, (tm, 1), 0) + row_off
    new_g = jnp.where(col_ids == diag_col, 0.0, new_g)

    # new_g = norm_g(new_g); g = norm_g(g + alpha * new_g)
    new_g = _row_degree_normalize(new_g)
    g = _row_degree_normalize(g + alpha * new_g)

    g_out_ref[...] = g.astype(g_out_ref.dtype)
    newg_out_ref[...] = new_g.astype(newg_out_ref.dtype)


def refined_graph(g, h, w, alpha, *, compute_dtype=jnp.bfloat16, tm=128):
    """Pallas implementation of RefinedGraph(metric='attention').forward.

    tm=128 matches the v5e/v7x MXU tiles; on v6e tm=256 can be used (VMEM
    permitting) to better fill the 256-wide MXU.
    """
    n = g.shape[0]
    d = h.shape[1]
    hd = w.shape[0]

    # Pad to lane/tile-aligned shapes only when needed (zeros are benign).
    n_pad = _round_up(max(n, tm), tm)
    d_pad = _round_up(max(d, 128), 128)
    hd_pad = _round_up(max(hd, 128), 128)

    cd_size = jnp.dtype(compute_dtype).itemsize
    is_f32 = jnp.dtype(compute_dtype) == jnp.dtype(jnp.float32)
    precision = lax.Precision.HIGHEST if is_f32 else None

    g_p = _maybe_pad(g, (n_pad, n_pad), jnp.float32)
    h_p = _maybe_pad(h, (n_pad, d_pad), jnp.float32)
    w_p = _maybe_pad(w, (hd_pad, d_pad), compute_dtype)   # pre-cast once

    grid = (n_pad // tm,)

    # Stage 1: projection + normalizations -> h_fc (N_pad, H_pad) in compute_dtype.
    stage1_need = (2 * tm * d_pad * 4               # h slab, double-buffered
                   + hd_pad * d_pad * cd_size       # resident weight, 1 buffer
                   + 2 * tm * hd_pad * cd_size)     # output slab, double-buffered
    hfc = pl.pallas_call(
        functools.partial(project_kernel, compute_dtype=compute_dtype,
                          precision=precision),
        out_shape=jax.ShapeDtypeStruct((n_pad, hd_pad), compute_dtype),
        grid=grid,
        in_specs=[
            pl.BlockSpec((tm, d_pad), lambda i: (i, 0)),
            pl.BlockSpec((hd_pad, d_pad), lambda i: (0, 0),
                         pipeline_mode=pl.Buffered(1)),   # grid-invariant weight
        ],
        out_specs=pl.BlockSpec((tm, hd_pad), lambda i: (i, 0)),
        compiler_params=pltpu.CompilerParams(
            dimension_semantics=("parallel",),
            vmem_limit_bytes=_vmem_limit_bytes(stage1_need)),
    )(h_p, w_p)

    # Stage 2: gram product, diag-zero, normalizations, alpha blend (row-tiled).
    # TODO(synk): for very large graphs (n_pad * (hfc + 3 f32 slabs) exceeding
    # VMEM, esp. on v7x's 64 MiB), column-tile the N axis with an "arbitrary"
    # grid dim and carry per-row degrees in VMEM scratch across column tiles.
    alpha_arr = jnp.asarray([alpha], dtype=jnp.float32)
    stage2_need = (2 * tm * n_pad * 4               # g slab, double-buffered
                   + n_pad * hd_pad * cd_size       # resident h_fc, 1 buffer
                   + 2 * 2 * tm * n_pad * 4)        # two f32 output slabs
    g_out, new_g = pl.pallas_call(
        functools.partial(refine_kernel, tm=tm, precision=precision),
        out_shape=(
            jax.ShapeDtypeStruct((n_pad, n_pad), jnp.float32),
            jax.ShapeDtypeStruct((n_pad, n_pad), jnp.float32),
        ),
        grid=grid,
        in_specs=[
            pl.BlockSpec(memory_space=pltpu.MemorySpace.SMEM),      # alpha scalar
            pl.BlockSpec((tm, n_pad), lambda i: (i, 0)),            # g row slab
            pl.BlockSpec((n_pad, hd_pad), lambda i: (0, 0),         # h_fc, resident
                         pipeline_mode=pl.Buffered(1)),
        ],
        out_specs=(
            pl.BlockSpec((tm, n_pad), lambda i: (i, 0)),
            pl.BlockSpec((tm, n_pad), lambda i: (i, 0)),
        ),
        compiler_params=pltpu.CompilerParams(
            dimension_semantics=("parallel",),
            vmem_limit_bytes=_vmem_limit_bytes(stage2_need)),
    )(alpha_arr, g_p, hfc)

    return g_out[:n, :n], new_g[:n, :n]


def refined_graph_ref(g, h, w, alpha):
    """Pure-JAX reference mirroring the PyTorch forward (f32, highest precision)."""
    hp = jax.lax.Precision.HIGHEST

    def l2norm(x):
        nrm = jnp.sqrt(jnp.sum(x * x, axis=-1, keepdims=True))
        return x / jnp.maximum(nrm, _EPS)

    def norm_g(m):
        deg = jnp.sum(m, axis=1, keepdims=True)
        deg = jnp.where(deg > 0.0, deg, 1.0)
        return m / deg

    h = l2norm(h)
    g = norm_g(g)
    h_fc = jnp.maximum(jnp.dot(h, w.T, precision=hp), 0.0)
    h_fc = l2norm(h_fc)
    new_g = jnp.dot(h_fc, h_fc.T, precision=hp)
    n = new_g.shape[0]
    new_g = new_g * (1.0 - jnp.eye(n, dtype=new_g.dtype))
    new_g = norm_g(new_g)
    g = norm_g(g + alpha * new_g)
    return g, new_g


if __name__ == "__main__":
    # Small shapes consistent with the module: N nodes, input_dim, dim_hidden.
    N, INPUT_DIM, DIM_HIDDEN = 8, 32, 32
    ALPHA = 0.5

    key = jax.random.PRNGKey(0)
    kg, kh, kw = jax.random.split(key, 3)

    g = jax.random.uniform(kg, (N, N), dtype=jnp.float32)        # non-negative adjacency
    h = jax.random.normal(kh, (N, INPUT_DIM), dtype=jnp.float32)
    # nn.Linear(input_dim, dim_hidden, bias=False): weight (dim_hidden, input_dim)
    bound = 1.0 / (INPUT_DIM ** 0.5)
    w = jax.random.uniform(
        kw, (DIM_HIDDEN, INPUT_DIM), dtype=jnp.float32, minval=-bound, maxval=bound)

    g_ref, new_g_ref = refined_graph_ref(g, h, w, ALPHA)

    # f32 compute path: tight check against the reference.
    g32, ng32 = refined_graph(g, h, w, ALPHA, compute_dtype=jnp.float32)
    jax.block_until_ready((g32, ng32))
    assert jnp.allclose(g32, g_ref, atol=1e-4, rtol=1e-4)
    assert jnp.allclose(ng32, new_g_ref, atol=1e-4, rtol=1e-4)

    # bf16 MXU path (default, faster): looser tolerance per bf16 operand rounding.
    gbf, ngbf = refined_graph(g, h, w, ALPHA)  # compute_dtype=bf16
    jax.block_until_ready((gbf, ngbf))
    assert jnp.allclose(gbf, g_ref, atol=3e-2, rtol=3e-2)
    assert jnp.allclose(ngbf, new_g_ref, atol=3e-2, rtol=3e-2)

    print("KERNEL_OK")
</pallas_src>

<mosaic_0001>
module attributes {stable_mosaic.version = 11 : i64} {
  func.func @project_kernel(%arg0: i32, %arg1: memref<128x128xf32, #tpu.memory_space<vmem>>, %arg2: memref<128x128xf32, #tpu.memory_space<vmem>>, %arg3: memref<128x128xf32, #tpu.memory_space<vmem>>) attributes {dimension_semantics = [#tpu.dimension_semantics<parallel>], iteration_bounds = array<i64: 1>, scalar_prefetch = 0 : i64, scratch_operands = 0 : i64, tpu.core_type = #tpu.core_type<tc>, window_params = [{transform_indices = @transform_0, window_bounds = array<i64: 128, 128>}, {pipeline_mode = #tpu.pipeline_mode<synchronous>, transform_indices = @transform_1, window_bounds = array<i64: 128, 128>}, {transform_indices = @transform_2, window_bounds = array<i64: 128, 128>}]} {
    %c0 = arith.constant 0 : index
    %c0_0 = arith.constant 0 : index
    %0 = vector.load %arg1[%c0, %c0_0] : memref<128x128xf32, #tpu.memory_space<vmem>>, vector<128x128xf32>
    %1 = arith.mulf %0, %0 : vector<128x128xf32>
    %cst = arith.constant dense<0.000000e+00> : vector<128xf32>
    %2 = vector.multi_reduction <add>, %1, %cst [1] : vector<128x128xf32> to vector<128xf32>
    %3 = vector.shape_cast %2 : vector<128xf32> to vector<128x1xf32>
    %cst_1 = arith.constant 1.000000e-24 : f32
    %4 = vector.broadcast %cst_1 : f32 to vector<128x1xf32>
    %5 = arith.maximumf %3, %4 : vector<128x1xf32>
    %6 = math.rsqrt %5 : vector<128x1xf32>
    %7 = vector.broadcast %6 : vector<128x1xf32> to vector<128x128xf32>
    %8 = arith.mulf %0, %7 : vector<128x128xf32>
    %c0_2 = arith.constant 0 : index
    %c0_3 = arith.constant 0 : index
    %9 = vector.load %arg2[%c0_2, %c0_3] : memref<128x128xf32, #tpu.memory_space<vmem>>, vector<128x128xf32>
    %cst_4 = arith.constant dense<0.000000e+00> : vector<128x128xf32>
    %10 = tpu.matmul %8, %9, %cst_4 {dimension_numbers = #tpu.dot_dimension_numbers<[1], [1], [0], [0], [0, 0, 1, 0], [], []>, precision = #tpu.contract_precision<fp32>} : vector<128x128xf32>, vector<128x128xf32>, vector<128x128xf32> -> vector<128x128xf32>
    %cst_5 = arith.constant 0.000000e+00 : f32
    %11 = vector.broadcast %cst_5 : f32 to vector<128x128xf32>
    %12 = arith.maximumf %10, %11 : vector<128x128xf32>
    %13 = arith.mulf %12, %12 : vector<128x128xf32>
    %cst_6 = arith.constant dense<0.000000e+00> : vector<128xf32>
    %14 = vector.multi_reduction <add>, %13, %cst_6 [1] : vector<128x128xf32> to vector<128xf32>
    %15 = vector.shape_cast %14 : vector<128xf32> to vector<128x1xf32>
    %cst_7 = arith.constant 1.000000e-24 : f32
    %16 = vector.broadcast %cst_7 : f32 to vector<128x1xf32>
    %17 = arith.maximumf %15, %16 : vector<128x1xf32>
    %18 = math.rsqrt %17 : vector<128x1xf32>
    %19 = vector.broadcast %18 : vector<128x1xf32> to vector<128x128xf32>
    %20 = arith.mulf %12, %19 : vector<128x128xf32>
    %c0_8 = arith.constant 0 : index
    %c0_9 = arith.constant 0 : index
    %21 = vector.load %arg3[%c0_8, %c0_9] : memref<128x128xf32, #tpu.memory_space<vmem>>, vector<128x128xf32>
    tpu.vector_store %arg3[%c0_8, %c0_9], %20 {strides = array<i32>} : memref<128x128xf32, #tpu.memory_space<vmem>>, vector<128x128xf32>,
    return
  }
  func.func @transform_0(%arg0: i32) -> (i32, i32) {
    %c0_i32 = arith.constant 0 : i32
    %c0_i32_0 = arith.constant 0 : i32
    return %arg0, %c0_i32 : i32, i32
  }
  func.func @transform_1(%arg0: i32) -> (i32, i32) {
    %c0_i32 = arith.constant 0 : i32
    %c0_i32_0 = arith.constant 0 : i32
    %c0_i32_1 = arith.constant 0 : i32
    return %c0_i32, %c0_i32_0 : i32, i32
  }
  func.func @transform_2(%arg0: i32) -> (i32, i32) {
    %c0_i32 = arith.constant 0 : i32
    %c0_i32_0 = arith.constant 0 : i32
    return %arg0, %c0_i32 : i32, i32
  }
}

</mosaic_0001>

<bundles_post_ra>
// kernel: tpu_custom_call.1
= control target key start
LH: loop header
LB: loop body
LE: loop exit
PB: predicated region body
PF: predicated region fallthrough
CT: control target
= control target key end

     0   :  { %7 = vsyncpa [#allocation3], 0  ;;  %s3207_s0 = inlined_call_operand.hbm [shape: f32[128,128], index: 0, kind: input, shape index: {}]   ;;  %s3208_s1 = inlined_call_operand.hbm [shape: f32[128,128], index: 1, kind: input, shape index: {}]   ;;  %s3209_s2 = inlined_call_operand.hbm [shape: f32[128,128], index: 2, kind: output, shape index: {}]  }
   0x1   :  { %8 = vsyncpa [#allocation6], 0 }
   0x2   :  { %9 = vsyncpa [#allocation4], 0  ;;  %s2541_s9 = smov [#allocation2]   ;;  %s2469_s13 = scalar_lea.hbm %s3207_s0, 2048 }
   0x3   :  { %s15_s10 = sshll.u32 %s2541_s9, 4  ;;  %p2470_p0 = scmp.ne.s32.totalorder %s3207_s0, %s2469_s13  ;;  %s16_s10 = int_to_ptr.vmem [resolvable:$true] %s15_s10 }
   0x4   :  { %p2473_p1 = scmp.lt.u32.totalorder %s2469_s13, %s3207_s0 }
   0x6   :  { %p2475_p2 = pnand %p2473_p1, %p2470_p0 }
   0x8   :  { %2478 = shalt.err (!%p2475_p2)
}
   0x9   :  { %s2479_s18 = scalar_lea.vmem %s16_s10, 2048  ;;  %p2484_p4 = scmp.lt.s32.totalorder %s16_s10, %s16_s10 }
   0xa   :  { %p2480_p3 = scmp.ne.s32.totalorder %s16_s10, %s2479_s18  ;;  %p2485_p5 = scmp.lt.s32.totalorder %s2479_s18, %s2479_s18 }
   0xc   :  { %p2486_p6 = por %p2485_p5, %p2484_p4 }
   0xe   :  { %p2487_p7 = pnand %p2486_p6, %p2480_p3 }
  0x10   :  { %2490 = shalt.err (!%p2487_p7)
}
  0x11   :  { %s2542_s19 = smov 128   ;;  %s2543_s20 = smov 8  }
  0x12   :  { %21 = dma.hbm_to_vmem [thread:$0]  %s3207_s0, 2048, %s16_s10, [#allocation3], %s2542_s19, %s2542_s19, %s2543_s20  }
  0x13   :  { %s2544_s23 = smov [#allocation5]   ;;  %s2491_s27 = scalar_lea.hbm %s3208_s1, 2048 }
  0x14   :  { %s27_s24 = sshll.u32 %s2544_s23, 4  ;;  %p2492_p8 = scmp.ne.s32.totalorder %s3208_s1, %s2491_s27  ;;  %s28_s24 = int_to_ptr.vmem [resolvable:$true] %s27_s24 }
  0x15   :  { %p2495_p9 = scmp.lt.u32.totalorder %s2491_s27, %s3208_s1 }
  0x17   :  { %p2497_p10 = pnand %p2495_p9, %p2492_p8 }
  0x19   :  { %2500 = shalt.err (!%p2497_p10)
}
  0x1a   :  { %s2501_s4 = scalar_lea.vmem %s28_s24, 2048  ;;  %p2506_p12 = scmp.lt.s32.totalorder %s28_s24, %s28_s24 }
  0x1b   :  { %p2502_p11 = scmp.ne.s32.totalorder %s28_s24, %s2501_s4  ;;  %p2507_p13 = scmp.lt.s32.totalorder %s2501_s4, %s2501_s4 }
  0x1d   :  { %p2508_p0 = por %p2507_p13, %p2506_p12 }
  0x1f   :  { %p2509_p1 = pnand %p2508_p0, %p2502_p11 }
  0x21   :  { %2512 = shalt.err (!%p2509_p1)
}
  0x22   :  { %33 = dma.hbm_to_vmem [thread:$0]  %s3208_s1, 2048, %s28_s24, [#allocation6], %s2542_s19, %s2542_s19, %s2543_s20  }
  0x23   :  { %2535 = dma.done.wait [#allocation3], 2048  }
  0x24   :  { %2536 = vsyncadd [#allocation3], 4294965248 }
  0x25   :  { %2537 = dma.done.wait [#allocation6], 2048  }
  0x26   :  { %2538 = vsyncadd [#allocation6], 4294965248  ;;  %v2591_v0 = vld [vmem:[#allocation2] sm:$0xff]  ;;  %v2593_v1 = vld [vmem:[#allocation2 + $0x10] sm:$0xff]  ;;  %s2545_s1 = smov [#allocation7]  }
  0x27   :  { %v2595_v2 = vld [vmem:[#allocation2 + $0x8] sm:$0xff]  ;;  %v56_v3 = vmul.f32 %v2591_v0, %v2591_v0  ;;  %v58_v4 = vmul.f32 %v2593_v1, %v2593_v1  ;;  %v2601_v5 = vld [vmem:[#allocation2 + $0x18] sm:$0xff]  ;;  %v2607_v8 = vld [vmem:[#allocation2 + $0x20] sm:$0xff]  ;;  %s1587_s6 = sshll.u32 %s2545_s1, 4  ;;  %s1588_s6 = int_to_ptr.vmem [resolvable:$true] %s1587_s6 }
  0x28   :  { %v57_v6 = vmul.f32 %v2595_v2, %v2595_v2  ;;  %v59_v7 = vmul.f32 %v2601_v5, %v2601_v5  ;;  %v2609_v9 = vld [vmem:[#allocation2 + $0x28] sm:$0xff]  ;;  %v2611_v10 = vld [vmem:[#allocation5] sm:$0xff]  ;;  %v2617_v14 = vld [vmem:[#allocation5 + $0x10] sm:$0xff]  ;;  %v60_v16 = vmul.f32 %v2607_v8, %v2607_v8  ;;  %s2513_s7 = scalar_lea.vmem %s1588_s6, 2048  ;;  %p2518_p3 = scmp.lt.s32.totalorder %s1588_s6, %s1588_s6 }
  0x29   :  { %72 = vadd.xlane.f32.xlu0 %v56_v3  ;;  %76 = vadd.xlane.f32.xlu1 %v58_v4  ;;  %v2613_v11 = vld [vmem:[#allocation5 + $0x8] sm:$0xff]  ;;  %v169_v12 = vand.u32 4294901760, %v2611_v10  ;;  %v2619_v15 = vld [vmem:[#allocation5 + $0x18] sm:$0xff]  ;;  %v61_v17 = vmul.f32 %v2609_v9, %v2609_v9  ;;  %v175_v18 = vand.u32 4294901760, %v2617_v14  ;;  %v2627_v20 = vld [vmem:[#allocation2 + $0x30] sm:$0xff]  ;;  %p2514_p2 = scmp.ne.s32.totalorder %s1588_s6, %s2513_s7  ;;  %p2519_p4 = scmp.lt.s32.totalorder %s2513_s7, %s2513_s7 }
  0x2a   :  { %v172_v13 = vand.u32 4294901760, %v2613_v11  ;;  %v178_v19 = vand.u32 4294901760, %v2619_v15  ;;  %v2629_v21 = vld [vmem:[#allocation2 + $0x38] sm:$0xff]  ;;  %v2645_v24 = vld [vmem:[#allocation5 + $0x20] sm:$0xff]  ;;  %v2647_v25 = vld [vmem:[#allocation5 + $0x28] sm:$0xff]  ;;  %v62_v26 = vmul.f32 %v2627_v20, %v2627_v20 }
  0x2b   :  { %v63_v27 = vmul.f32 %v2629_v21, %v2629_v21  ;;  %v2653_v28 = vld [vmem:[#allocation2 + $0x40] sm:$0xff]  ;;  %v2655_v29 = vld [vmem:[#allocation2 + $0x48] sm:$0xff]  ;;  %v181_v30 = vand.u32 4294901760, %v2645_v24  ;;  %v184_v31 = vand.u32 4294901760, %v2647_v25  ;;  %v2667_v34 = vld [vmem:[#allocation2 + $0x50] sm:$0xff]  ;;  %v2736_v3 = vsub.f32 %v2617_v14, %v175_v18  ;;  %p2520_p5 = por %p2519_p4, %p2518_p3 }
  0x2c   :  { %v2635_v22 = vpack.c.bf16 %v172_v13, %v169_v12  ;;  %v2641_v23 = vpack.c.bf16 %v178_v19, %v175_v18  ;;  %v64_v32 = vmul.f32 %v2653_v28, %v2653_v28  ;;  %v65_v33 = vmul.f32 %v2655_v29, %v2655_v29  ;;  %v2669_v35 = vld [vmem:[#allocation2 + $0x58] sm:$0xff]  ;;  %v2677_v37 = vld [vmem:[#allocation5 + $0x30] sm:$0xff]  ;;  %v2685_v41 = vld [vmem:[#allocation2 + $0x60] sm:$0xff] }
  0x2d   :  { %74 = vadd.xlane.f32.xlu0 %v57_v6  ;;  %78 = vadd.xlane.f32.xlu1 %v59_v7  ;;  %v2675_v36 = vpack.c.bf16 %v184_v31, %v181_v30  ;;  %v2679_v38 = vld [vmem:[#allocation5 + $0x38] sm:$0xff]  ;;  %v66_v39 = vmul.f32 %v2667_v34, %v2667_v34  ;;  %v67_v40 = vmul.f32 %v2669_v35, %v2669_v35  ;;  %v2687_v42 = vld [vmem:[#allocation2 + $0x68] sm:$0xff]  ;;  %v187_v43 = vand.u32 4294901760, %v2677_v37  ;;  %v2699_v47 = vld [vmem:[#allocation2 + $0x70] sm:$0xff]  ;;  %p2521_p6 = pnand %p2520_p5, %p2514_p2 }
  0x2e   :  { %2225 = vmatprep.subr.bf16.mxu0 %v2635_v22  ;;  %2129 = vmatprep.subr.bf16.mxu1 %v2635_v22  ;;  %v190_v44 = vand.u32 4294901760, %v2679_v38  ;;  %v68_v45 = vmul.f32 %v2685_v41, %v2685_v41  ;;  %v69_v46 = vmul.f32 %v2687_v42, %v2687_v42  ;;  %v2701_v48 = vld [vmem:[#allocation2 + $0x78] sm:$0xff]  ;;  %v2709_v50 = vld [vmem:[#allocation5 + $0x40] sm:$0xff]  ;;  %v2711_v51 = vld [vmem:[#allocation5 + $0x48] sm:$0xff]  ;;  %v70_v52 = vmul.f32 %v2699_v47, %v2699_v47 }
  0x2f   :  { %2227 = vmatpush3.bf16.xpose.msra.mxu0 %v2635_v22  ;;  %2131 = vmatpush3.bf16.xpose.msra.mxu1 %v2635_v22  ;;  %v71_v53 = vmul.f32 %v2701_v48, %v2701_v48  ;;  %v193_v54 = vand.u32 4294901760, %v2709_v50  ;;  %v196_v55 = vand.u32 4294901760, %v2711_v51  ;;  %v162_v57 = vld [vmem:[#allocation5 + $0x50] sm:$0xff]  ;;  %v163_v58 = vld [vmem:[#allocation5 + $0x58] sm:$0xff]  ;;  %v164_v62 = vld [vmem:[#allocation5 + $0x60] sm:$0xff]  ;;  %v2741_v4 = vsub.f32 %v2619_v15, %v178_v19 }
  0x30   :  { %2229 = vmatprep.subr.bf16.mxu0 %v2641_v23  ;;  %2133 = vmatprep.subr.bf16.mxu1 %v2641_v23  ;;  %v2707_v49 = vpack.c.bf16 %v190_v44, %v187_v43  ;;  %v199_v59 = vand.u32 4294901760, %v162_v57  ;;  %v202_v60 = vand.u32 4294901760, %v163_v58  ;;  %v165_v63 = vld [vmem:[#allocation5 + $0x68] sm:$0xff]  ;;  %v205_v6 = vand.u32 4294901760, %v164_v62  ;;  %v166_v15 = vld [vmem:[#allocation5 + $0x70] sm:$0xff]  ;;  %v167_v18 = vld [vmem:[#allocation5 + $0x78] sm:$0xff] }
  0x31   :  { %80 = vadd.xlane.f32.xlu0 %v60_v16  ;;  %82 = vadd.xlane.f32.xlu1 %v61_v17  ;;  %v2723_v56 = vpack.c.bf16 %v196_v55, %v193_v54  ;;  %v208_v7 = vand.u32 4294901760, %v165_v63  ;;  %v2750_v17 = vsub.f32 %v2611_v10, %v169_v12  ;;  %v2755_v14 = vsub.f32 %v2613_v11, %v172_v13 }
  0x32   :  { %v2729_v61 = vpack.c.bf16 %v202_v60, %v199_v59  ;;  %v2762_v19 = vsub.f32 %v2645_v24, %v181_v30  ;;  %v2767_v10 = vsub.f32 %v2647_v25, %v184_v31  ;;  %v211_v11 = vand.u32 4294901760, %v166_v15 }
  0x33   :  { %3227 = vst [vmem:[#allocation11_spill] sm:$0xff] %v2723_v56  ;;  %v2745_v16 = vpack.c.bf16 %v208_v7, %v205_v6  ;;  %v214_v12 = vand.u32 4294901760, %v167_v18  ;;  %v412_v13 = vand.u32 4294901760, %v2750_v17  ;;  %v2782_v25 = vsub.f32 %v2677_v37, %v187_v43 }
  0x34   :  { %3228 = vst [vmem:[#allocation12_spill] sm:$0xff] %v2729_v61  ;;  %v2787_v31 = vsub.f32 %v2679_v38, %v190_v44  ;;  %v2798_v37 = vsub.f32 %v2709_v50, %v193_v54  ;;  %v2801_v38 = vsub.f32 %v2711_v51, %v196_v55  ;;  %v2805_v43 = vsub.f32 %v162_v57, %v199_v59 }
  0x35   :  { %84 = vadd.xlane.f32.xlu0 %v62_v26  ;;  %86 = vadd.xlane.f32.xlu1 %v63_v27  ;;  %3229 = vst [vmem:[#allocation13_spill] sm:$0xff] %v2745_v16  ;;  %v419_v26 = vand.u32 4294901760, %v2755_v14  ;;  %v2773_v27 = vpack.c.bf16 %v214_v12, %v211_v11  ;;  %v413_v24 = vsub.f32 %v2750_v17, %v412_v13 }
  0x36   :  { %v2807_v44 = vsub.f32 %v163_v58, %v202_v60  ;;  %v426_v58 = vand.u32 4294901760, %v2736_v3  ;;  %v433_v60 = vand.u32 4294901760, %v2741_v4 }
  0x37   :  { %2231 = vmatpush3.bf16.xpose.msra.mxu0 %v2641_v23  ;;  %2135 = vmatpush3.bf16.xpose.msra.mxu1 %v2641_v23  ;;  %3230 = vst [vmem:[#allocation14_spill] sm:$0xff] %v2773_v27  ;;  %v420_v30 = vsub.f32 %v2755_v14, %v419_v26 }
  0x38   :  { %2233 = vmatprep.subr.bf16.mxu0 %v2675_v36  ;;  %2137 = vmatprep.subr.bf16.mxu1 %v2675_v36 }
  0x39   :  { %88 = vadd.xlane.f32.xlu0 %v64_v32  ;;  %90 = vadd.xlane.f32.xlu1 %v65_v33  ;;  %v414_v32 = vand.u32 4294901760, %v413_v24  ;;  %v421_v33 = vand.u32 4294901760, %v420_v30 }
  0x3d   :  { %92 = vadd.xlane.f32.xlu0 %v66_v39  ;;  %94 = vadd.xlane.f32.xlu1 %v67_v40  ;;  %v2791_v39 = vpack.c.bf16 %v419_v26, %v412_v13  ;;  %v2793_v40 = vpack.c.bf16 %v421_v33, %v414_v32 }
  0x3f   :  { %2235 = vmatpush3.bf16.xpose.msra.mxu0 %v2675_v36  ;;  %2139 = vmatpush3.bf16.xpose.msra.mxu1 %v2675_v36 }
  0x40   :  { %2237 = vmatprep.subr.bf16.mxu0 %v2707_v49  ;;  %2141 = vmatprep.subr.bf16.mxu1 %v2707_v49 }
  0x41   :  { %96 = vadd.xlane.f32.xlu0 %v68_v45  ;;  %98 = vadd.xlane.f32.xlu1 %v69_v46  ;;  %v2809_v45 = vsub.f32 %v164_v62, %v205_v6  ;;  %v2811_v46 = vsub.f32 %v165_v63, %v208_v7 }
  0x45   :  { %100 = vadd.xlane.f32.xlu0 %v70_v52  ;;  %102 = vadd.xlane.f32.xlu1 %v71_v53  ;;  %v2813_v52 = vsub.f32 %v166_v15, %v211_v11  ;;  %v2815_v53 = vsub.f32 %v167_v18, %v214_v12  ;;  %v427_v15 = vsub.f32 %v2736_v3, %v426_v58  ;;  %v440_v11 = vand.u32 4294901760, %v2762_v19 }
  0x46   :  { %v434_v18 = vsub.f32 %v2741_v4, %v433_v60  ;;  %v447_v12 = vand.u32 4294901760, %v2767_v10 }
  0x47   :  { %2239 = vmatpush3.bf16.xpose.msra.mxu0 %v2707_v49  ;;  %2143 = vmatpush3.bf16.xpose.msra.mxu1 %v2707_v49 }
  0x48   :  { %2241 = vmatprep.subr.bf16.mxu0 %v2723_v56  ;;  %2145 = vmatprep.subr.bf16.mxu1 %v2723_v56 }
  0x4f   :  { %2243 = vmatpush3.bf16.xpose.msra.mxu0 %v2723_v56  ;;  %2147 = vmatpush3.bf16.xpose.msra.mxu1 %v2723_v56 }
  0x50   :  { %2245 = vmatprep.subr.bf16.mxu0 %v2729_v61  ;;  %2149 = vmatprep.subr.bf16.mxu1 %v2729_v61 }
  0x57   :  { %2247 = vmatpush3.bf16.xpose.msra.mxu0 %v2729_v61  ;;  %2151 = vmatpush3.bf16.xpose.msra.mxu1 %v2729_v61 }
  0x58   :  { %2249 = vmatprep.subr.bf16.mxu0 %v2745_v16  ;;  %2153 = vmatprep.subr.bf16.mxu1 %v2745_v16 }
  0x5f   :  { %2251 = vmatpush3.bf16.xpose.msra.mxu0 %v2745_v16  ;;  %2155 = vmatpush3.bf16.xpose.msra.mxu1 %v2745_v16 }
  0x60   :  { %2253 = vmatprep.subr.bf16.mxu0 %v2773_v27  ;;  %2157 = vmatprep.subr.bf16.mxu1 %v2773_v27 }
  0x67   :  { %2255 = vmatpush3.bf16.xpose.msra.mxu0 %v2773_v27  ;;  %2159 = vmatpush3.bf16.xpose.msra.mxu1 %v2773_v27 }
  0x68   :  { %2257 = vmatprep.subr.bf16.mxu0 %v2791_v39  ;;  %2161 = vmatprep.subr.bf16.mxu1 %v2793_v40 }
  0xb6   :  { %v73_v50 = vpop.xlane.xlu0 %72  ;;  %v77_v54 = vpop.xlane.xlu1 %76 }
  0xb7   :  { %v104_v51 = vmax.f32 %v73_v50, 1e-24  ;;  %v106_v55 = vmax.f32 %v77_v54, 1e-24  ;;  %v428_v54 = vand.u32 4294901760, %v427_v15 }
  0xb9   :  { %2405 = vrsqrt.f32 %v104_v51  ;;  %v435_v51 = vand.u32 4294901760, %v434_v18 }
  0xba   :  { %2407 = vrsqrt.f32 %v106_v55  ;;  %v75_v13 = vpop.xlane.xlu0 %74  ;;  %v79_v26 = vpop.xlane.xlu1 %78 }
  0xbb   :  { %v105_v57 = vmax.f32 %v75_v13, 1e-24  ;;  %v107_v59 = vmax.f32 %v79_v26, 1e-24  ;;  %v2825_v26 = vsub.f32 %v2762_v19, %v440_v11 }
  0xbd   :  { %2409 = vrsqrt.f32 %v105_v57 }
  0xbe   :  { %2411 = vrsqrt.f32 %v107_v59  ;;  %v81_v62 = vpop.xlane.xlu0 %80  ;;  %v83_v63 = vpop.xlane.xlu1 %82  ;;  %v2829_v59 = vsub.f32 %v2767_v10, %v447_v12 }
  0xbf   :  { %v108_v6 = vmax.f32 %v81_v62, 1e-24  ;;  %v109_v7 = vmax.f32 %v83_v63, 1e-24 }
  0xc1   :  { %2413 = vrsqrt.f32 %v108_v6 }
  0xc2   :  { %2415 = vrsqrt.f32 %v109_v7  ;;  %v85_v24 = vpop.xlane.xlu0 %84  ;;  %v87_v30 = vpop.xlane.xlu1 %86  ;;  %v2833_v7 = vpack.c.bf16 %v433_v60, %v426_v58 }
  0xc3   :  { %v2406_v32 = vpop.eup %2405  ;;  %v110_v33 = vmax.f32 %v85_v24, 1e-24  ;;  %v111_v50 = vmax.f32 %v87_v30, 1e-24  ;;  %v2837_v30 = vpack.c.bf16 %v435_v51, %v428_v54 }
  0xc4   :  { %v2408_v55 = vpop.eup %2407  ;;  %v136_v13 = vmul.f32 %v2406_v32, %v2591_v0 }
  0xc5   :  { %2417 = vrsqrt.f32 %v110_v33  ;;  %v138_v57 = vmul.f32 %v2408_v55, %v2593_v1 }
  0xc6   :  { %2419 = vrsqrt.f32 %v111_v50  ;;  %v89_v62 = vpop.xlane.xlu0 %88  ;;  %v91_v63 = vpop.xlane.xlu1 %90  ;;  %v2831_v6 = vand.u32 4294901760, %v136_v13  ;;  %v2843_v50 = vpack.c.bf16 %v447_v12, %v440_v11 }
  0xc7   :  { %v2410_v15 = vpop.eup %2409  ;;  %v112_v18 = vmax.f32 %v89_v62, 1e-24  ;;  %v113_v24 = vmax.f32 %v91_v63, 1e-24  ;;  %v2835_v0 = vand.u32 4294901760, %v138_v57 }
  0xc8   :  { %v2412_v32 = vpop.eup %2411  ;;  %v2840_v1 = vsub.f32 %v136_v13, %v2831_v6  ;;  %v137_v33 = vmul.f32 %v2410_v15, %v2595_v2 }
  0xc9   :  { %2421 = vrsqrt.f32 %v112_v18  ;;  %v2847_v58 = vsub.f32 %v138_v57, %v2835_v0  ;;  %v139_v60 = vmul.f32 %v2412_v32, %v2601_v5 }
  0xca   :  { %3231 = vst [vmem:[#allocation15_spill] sm:$0xff] %v2840_v1  ;;  %2423 = vrsqrt.f32 %v113_v24  ;;  %v251_v54 = vand.u32 4294901760, %v2840_v1  ;;  %v93_v51 = vpop.xlane.xlu0 %92  ;;  %v95_v13 = vpop.xlane.xlu1 %94  ;;  %v2852_v63 = vand.u32 4294901760, %v137_v33 }
  0xcb   :  { %3232 = vst [vmem:[#allocation16_spill] sm:$0xff] %v2847_v58  ;;  %v2414_v11 = vpop.eup %2413  ;;  %v114_v12 = vmax.f32 %v93_v51, 1e-24  ;;  %v115_v15 = vmax.f32 %v95_v13, 1e-24  ;;  %v271_v18 = vand.u32 4294901760, %v2847_v58 }
  0xcc   :  { %v2856_v57 = vand.u32 4294901760, %v139_v60  ;;  %v2416_v55 = vpop.eup %2415  ;;  %1992 = vmatprep.mubr.f32.mxu0 %v251_v54  ;;  %v252_v5 = vsub.f32 %v2840_v1, %v251_v54  ;;  %v2860_v24 = vsub.f32 %v137_v33, %v2852_v63  ;;  %v140_v32 = vmul.f32 %v2414_v11, %v2607_v8 }
  0xcd   :  { %2425 = vrsqrt.f32 %v114_v12  ;;  %v272_v51 = vsub.f32 %v2847_v58, %v271_v18  ;;  %v141_v13 = vmul.f32 %v2416_v55, %v2609_v9 }
  0xce   :  { %3233 = vst [vmem:[#allocation17_spill] sm:$0xff] %v2860_v24  ;;  %v2865_v2 = vsub.f32 %v139_v60, %v2856_v57  ;;  %2427 = vrsqrt.f32 %v115_v15  ;;  %v253_v27 = vand.u32 4294901760, %v252_v5  ;;  %v261_v16 = vand.u32 4294901760, %v2860_v24  ;;  %v97_v54 = vpop.xlane.xlu0 %96  ;;  %v99_v61 = vpop.xlane.xlu1 %98 }
  0xcf   :  { %v2870_v33 = vand.u32 4294901760, %v140_v32  ;;  %v2418_v1 = vpop.eup %2417  ;;  %v116_v8 = vmax.f32 %v97_v54, 1e-24  ;;  %v117_v11 = vmax.f32 %v99_v61, 1e-24  ;;  %v3234_v60 = vand.u32 4294901760, %v2782_v25 }
  0xd0   :  { %v281_v12 = vand.u32 4294901760, %v2865_v2  ;;  %v2420_v58 = vpop.eup %2419  ;;  %1824 = vmatprep.mubr.f32.mxu1 %v253_v27  ;;  %1993 = vmatmul.mubr.f32.vlgmr.msra.gmra.mrb[0].mxu0 %v261_v16  ;;  %v262_v9 = vsub.f32 %v2860_v24, %v261_v16  ;;  %v2882_v15 = vand.u32 4294901760, %v141_v13  ;;  %v142_v5 = vmul.f32 %v2418_v1, %v2627_v20 }
  0xd1   :  { %v2876_v62 = vsub.f32 %v2782_v25, %v3234_v60  ;;  %v2880_v55 = vsub.f32 %v140_v32, %v2870_v33  ;;  %2259 = vmatpush3.bf16.xpose.msra.mxu0 %v2791_v39  ;;  %2429 = vrsqrt.f32 %v116_v8  ;;  %1995 = vmatprep.mubr.f32.mxu0 %v271_v18  ;;  %v273_v61 = vand.u32 4294901760, %v272_v51 }
  0xd2   :  { %v282_v54 = vsub.f32 %v2865_v2, %v281_v12  ;;  %v143_v60 = vmul.f32 %v2420_v58, %v2629_v21  ;;  %2431 = vrsqrt.f32 %v117_v11  ;;  %v263_v27 = vand.u32 4294901760, %v262_v9  ;;  %v101_v56 = vpop.xlane.xlu0 %100  ;;  %v103_v16 = vpop.xlane.xlu1 %102  ;;  %2261 = vmatprep.subr.bf16.mxu0 %v2833_v7 }
  0xd3   :  { %3235 = vst [vmem:[#allocation18_spill] sm:$0xff] %v2880_v55  ;;  %v291_v32 = vand.u32 4294901760, %v2880_v55  ;;  %v2891_v24 = vsub.f32 %v141_v13, %v2882_v15  ;;  %v2422_v20 = vpop.eup %2421  ;;  %v118_v39 = vmax.f32 %v101_v56, 1e-24  ;;  %v119_v1 = vmax.f32 %v103_v16, 1e-24 }
  0xd4   :  { %v283_v18 = vand.u32 4294901760, %v282_v54  ;;  %v2893_v51 = vand.u32 4294901760, %v142_v5  ;;  %v2424_v8 = vpop.eup %2423  ;;  %1825 = vmatmul.mubr.f32.vlgmr.msra.gmra.mrb[0].mxu1 %v263_v27  ;;  %1996 = vmatmul.mubr.f32.gmra.mrb[2].mxu0 %v281_v12  ;;  %v2897_v11 = vand.u32 4294901760, %v143_v60  ;;  %v144_v9 = vmul.f32 %v2422_v20, %v2653_v28 }
  0xd5   :  { %3236 = vst [vmem:[#allocation19_spill] sm:$0xff] %v2891_v24  ;;  %v301_v21 = vand.u32 4294901760, %v2891_v24  ;;  %v292_v58 = vsub.f32 %v2880_v55, %v291_v32  ;;  %2163 = vmatpush3.bf16.xpose.msra.mxu1 %v2793_v40  ;;  %2433 = vrsqrt.f32 %v118_v39  ;;  %1827 = vmatprep.mubr.f32.mxu1 %v273_v61  ;;  %v145_v13 = vmul.f32 %v2424_v8, %v2655_v29 }
  0xd6   :  { %v2902_v56 = vsub.f32 %v142_v5, %v2893_v51  ;;  %v3237_v54 = vand.u32 4294901760, %v2787_v31  ;;  %2435 = vrsqrt.f32 %v119_v1  ;;  %1998 = vmatprep.mubr.f32.mxu0 %v291_v32  ;;  %2165 = vmatprep.subr.bf16.mxu1 %v2837_v30  ;;  %v2911_v40 = vsub.f32 %v143_v60, %v2897_v11 }
  0xd7   :  { %v293_v27 = vand.u32 4294901760, %v292_v58  ;;  %v302_v28 = vsub.f32 %v2891_v24, %v301_v21  ;;  %v2426_v61 = vpop.eup %2425  ;;  %v2914_v16 = vand.u32 4294901760, %v144_v9  ;;  %v2916_v29 = vand.u32 4294901760, %v145_v13 }
  0xd8   :  { %v462_v12 = vsub.f32 %v2787_v31, %v3237_v54  ;;  %3238 = vst [vmem:[#allocation20_spill] sm:$0xff] %v2911_v40  ;;  %v311_v5 = vand.u32 4294901760, %v2902_v56  ;;  %v3239_v20 = vand.u32 4294901760, %v2825_v26  ;;  %v3240_v39 = vand.u32 4294901760, %v2829_v59  ;;  %v2428_v1 = vpop.eup %2427  ;;  %1828 = vmatmul.mubr.f32.gmra.mrb[2].mxu1 %v283_v18  ;;  %1999 = vmatmul.mubr.f32.gmra.mrb[4].mxu0 %v301_v21 }
  0xd9   :  { %v303_v8 = vand.u32 4294901760, %v302_v28  ;;  %v321_v60 = vand.u32 4294901760, %v2911_v40  ;;  %v146_v58 = vmul.f32 %v2426_v61, %v2667_v34  ;;  %v3241_v54 = vand.u32 4294901760, %v2782_v25  ;;  %2263 = vmatpush3.bf16.xpose.msra.mxu0 %v2833_v7  ;;  %1830 = vmatprep.mubr.f32.mxu1 %v293_v27 }
  0xda   :  { %v2922_v32 = vpack.c.bf16 %v3240_v39, %v3239_v20  ;;  %v3242_v24 = vand.u32 4294901760, %v2787_v31  ;;  %v312_v26 = vsub.f32 %v2902_v56, %v311_v5  ;;  %v2935_v59 = vsub.f32 %v144_v9, %v2914_v16  ;;  %2001 = vmatprep.mubr.f32.mxu0 %v311_v5  ;;  %2265 = vmatprep.subr.bf16.mxu0 %v2843_v50 }
  0xdb   :  { %v2938_v18 = vsub.f32 %v145_v13, %v2916_v29  ;;  %v456_v21 = vand.u32 4294901760, %v2876_v62  ;;  %v322_v34 = vsub.f32 %v2911_v40, %v321_v60  ;;  %v147_v7 = vmul.f32 %v2428_v1, %v2669_v35  ;;  %v2430_v28 = vpop.eup %2429 }
  0xdc   :  { %v2930_v55 = vpack.c.bf16 %v3242_v24, %v3241_v54  ;;  %3243 = vst [vmem:[#allocation21_spill] sm:$0xff] %v2935_v59  ;;  %v2943_v24 = vand.u32 4294901760, %v146_v58  ;;  %v463_v27 = vand.u32 4294901760, %v462_v12  ;;  %v313_v61 = vand.u32 4294901760, %v312_v26  ;;  %v2432_v39 = vpop.eup %2431  ;;  %1831 = vmatmul.mubr.f32.gmra.mrb[4].mxu1 %v303_v8  ;;  %2002 = vmatmul.mubr.f32.gmra.mrb[6].mxu0 %v321_v60 }
  0xdd   :  { %3244 = vst [vmem:[#allocation22_spill] sm:$0xff] %v2938_v18  ;;  %v331_v9 = vand.u32 4294901760, %v2935_v59  ;;  %v341_v20 = vand.u32 4294901760, %v2938_v18  ;;  %v468_v13 = vand.u32 4294901760, %v2798_v37  ;;  %v323_v62 = vand.u32 4294901760, %v322_v34  ;;  %2167 = vmatpush3.bf16.xpose.msra.mxu1 %v2837_v30 }
  0xde   :  { %v2950_v5 = vsub.f32 %v146_v58, %v2943_v24  ;;  %v2952_v54 = vand.u32 4294901760, %v147_v7  ;;  %v148_v35 = vmul.f32 %v2430_v28, %v2685_v41  ;;  %1833 = vmatprep.mubr.f32.mxu1 %v313_v61  ;;  %v149_v26 = vmul.f32 %v2432_v39, %v2687_v42  ;;  %2169 = vmatprep.subr.bf16.mxu1 %v2922_v32 }
  0xdf   :  { %v332_v12 = vsub.f32 %v2935_v59, %v331_v9  ;;  %v342_v1 = vsub.f32 %v2938_v18, %v341_v20  ;;  %v475_v8 = vand.u32 4294901760, %v2801_v38  ;;  %2004 = vmatprep.mubr.f32.mxu0 %v331_v9  ;;  %v2172_v30 = vpack.c.bf16 %v463_v27, %v456_v21  ;;  %v2434_v34 = vpop.eup %2433 }
  0xe0   :  { %v351_v60 = vand.u32 4294901760, %v2950_v5  ;;  %v2963_v58 = vsub.f32 %v147_v7, %v2952_v54  ;;  %v2965_v41 = vand.u32 4294901760, %v148_v35  ;;  %v2967_v59 = vand.u32 4294901760, %v149_v26  ;;  %v2436_v39 = vpop.eup %2435  ;;  %1834 = vmatmul.mubr.f32.gmra.mrb[6].mxu1 %v323_v62  ;;  %2005 = vmatmul.mubr.f32.gmra.mrb[8].mxu0 %v341_v20 }
  0xe1   :  { %v333_v28 = vand.u32 4294901760, %v332_v12  ;;  %v343_v61 = vand.u32 4294901760, %v342_v1  ;;  %v469_v42 = vsub.f32 %v2798_v37, %v468_v13  ;;  %v150_v40 = vmul.f32 %v2434_v34, %v2699_v47  ;;  %2267 = vmatpush3.bf16.xpose.msra.mxu0 %v2843_v50 }
  0xe2   :  { %3245 = vst [vmem:[#allocation23_spill] sm:$0xff] %v2963_v58  ;;  %v361_v9 = vand.u32 4294901760, %v2963_v58  ;;  %v352_v18 = vsub.f32 %v2950_v5, %v351_v60  ;;  %v2973_v7 = vsub.f32 %v148_v35, %v2965_v41  ;;  %v2978_v21 = vsub.f32 %v149_v26, %v2967_v59  ;;  %2007 = vmatprep.mubr.f32.mxu0 %v351_v60 }
  0xe3   :  { %1836 = vmatprep.mubr.f32.mxu1 %v333_v28  ;;  %v151_v27 = vmul.f32 %v2436_v39, %v2701_v48  ;;  %v476_v62 = vsub.f32 %v2801_v38, %v475_v8  ;;  %2269 = vmatprep.subr.bf16.mxu0 %v2930_v55  ;;  %v2985_v1 = vand.u32 4294901760, %v150_v40  ;;  %v470_v39 = vand.u32 4294901760, %v469_v42 }
  0xe4   :  { %v353_v20 = vand.u32 4294901760, %v352_v18  ;;  %v371_v12 = vand.u32 4294901760, %v2973_v7  ;;  %v362_v35 = vsub.f32 %v2963_v58, %v361_v9  ;;  %v381_v47 = vand.u32 4294901760, %v2978_v21  ;;  %1837 = vmatmul.mubr.f32.gmra.mrb[8].mxu1 %v343_v61  ;;  %2008 = vmatmul.mubr.f32.gmra.mrb[10].mxu0 %v361_v9 }
  0xe5   :  { %v2988_v50 = vand.u32 4294901760, %v151_v27  ;;  %v2992_v60 = vsub.f32 %v150_v40, %v2985_v1  ;;  %v2272_v18 = vpack.c.bf16 %v475_v8, %v468_v13  ;;  %2171 = vmatpush3.bf16.xpose.msra.mxu1 %v2922_v32  ;;  %v477_v58 = vand.u32 4294901760, %v476_v62 }
  0xe6   :  { %v363_v26 = vand.u32 4294901760, %v362_v35  ;;  %v372_v48 = vsub.f32 %v2973_v7, %v371_v12  ;;  %1839 = vmatprep.mubr.f32.mxu1 %v353_v20  ;;  %v382_v34 = vsub.f32 %v2978_v21, %v381_v47  ;;  %2010 = vmatprep.mubr.f32.mxu0 %v371_v12  ;;  %v482_v35 = vand.u32 4294901760, %v2805_v43 }
  0xe7   :  { %v2997_v28 = vsub.f32 %v151_v27, %v2988_v50  ;;  %2173 = vmatprep.subr.bf16.mxu1 %v2172_v30  ;;  %v391_v9 = vand.u32 4294901760, %v2992_v60  ;;  %v489_v40 = vand.u32 4294901760, %v2807_v44  ;;  %v2176_v62 = vpack.c.bf16 %v477_v58, %v470_v39 }
  0xe8   :  { %v373_v61 = vand.u32 4294901760, %v372_v48  ;;  %1840 = vmatmul.mubr.f32.gmra.mrb[10].mxu1 %v363_v26  ;;  %2011 = vmatmul.mubr.f32.gmra.mrb[12].mxu0 %v381_v47  ;;  %v383_v32 = vand.u32 4294901760, %v382_v34  ;;  %v483_v20 = vsub.f32 %v2805_v43, %v482_v35  ;;  %v496_v34 = vand.u32 4294901760, %v2809_v45 }
  0xe9   :  { %v401_v13 = vand.u32 4294901760, %v2997_v28  ;;  %v392_v8 = vsub.f32 %v2992_v60, %v391_v9  ;;  %2271 = vmatpush3.bf16.xpose.msra.mxu0 %v2930_v55  ;;  %2013 = vmatprep.mubr.f32.mxu0 %v391_v9  ;;  %v490_v12 = vsub.f32 %v2807_v44, %v489_v40  ;;  %v2276_v47 = vpack.c.bf16 %v489_v40, %v482_v35 }
  0xea   :  { %1842 = vmatprep.mubr.f32.mxu1 %v373_v61  ;;  %2273 = vmatprep.subr.bf16.mxu0 %v2272_v18  ;;  %v484_v55 = vand.u32 4294901760, %v483_v20  ;;  %v503_v61 = vand.u32 4294901760, %v2811_v46  ;;  %v497_v39 = vsub.f32 %v2809_v45, %v496_v34 }
  0xeb   :  { %v402_v42 = vsub.f32 %v2997_v28, %v401_v13  ;;  %v393_v27 = vand.u32 4294901760, %v392_v8  ;;  %v491_v48 = vand.u32 4294901760, %v490_v12 }
  0xec   :  { %1843 = vmatmul.mubr.f32.gmra.mrb[12].mxu1 %v383_v32  ;;  %2014 = vmatmul.mubr.f32.gmra.mrb[14].mxu0 %v401_v13  ;;  %v2280_v9 = vpack.c.bf16 %v503_v61, %v496_v34  ;;  %v498_v35 = vand.u32 4294901760, %v497_v39  ;;  %v510_v13 = vand.u32 4294901760, %v2813_v52  ;;  %v517_v32 = vand.u32 4294901760, %v2815_v53 }
  0xed   :  { %v403_v26 = vand.u32 4294901760, %v402_v42  ;;  %2175 = vmatpush3.bf16.xpose.msra.mxu1 %v2172_v30  ;;  %2048 = vmatprep.mubr.f32.mxu0 %v2831_v6  ;;  %v2180_v58 = vpack.c.bf16 %v491_v48, %v484_v55  ;;  %v504_v30 = vsub.f32 %v2811_v46, %v503_v61 }
  0xee   :  { %1845 = vmatprep.mubr.f32.mxu1 %v393_v27  ;;  %2177 = vmatprep.subr.bf16.mxu1 %v2176_v62  ;;  %v511_v8 = vsub.f32 %v2813_v52, %v510_v13  ;;  %v518_v42 = vsub.f32 %v2815_v53, %v517_v32  ;;  %v2284_v27 = vpack.c.bf16 %v517_v32, %v510_v13 }
  0xef   :  { %v505_v40 = vand.u32 4294901760, %v504_v30 }
  0xf0   :  { %1846 = vmatmul.mubr.f32.gmra.mrb[14].mxu1 %v403_v26  ;;  %v512_v20 = vand.u32 4294901760, %v511_v8  ;;  %v2192_v26 = vpack.c.bf16 %v2755_v14, %v2750_v17  ;;  %v3248_v17 = vld [vmem:[#allocation12_spill] sm:$0xff]  ;;  %v2216_v14 = vpack.c.bf16 %v2811_v46, %v2809_v45  ;;  %v3256_v45 = vld [vmem:[#allocation21_spill] sm:$0xff]  ;;  %v3257_v46 = vld [vmem:[#allocation22_spill] sm:$0xff] }
  0xf1   :  { %2275 = vmatpush3.bf16.xpose.msra.mxu0 %v2272_v18  ;;  %1880 = vmatprep.mubr.f32.mxu1 %v2831_v6  ;;  %v2184_v18 = vpack.c.bf16 %v505_v40, %v498_v35 }
  0xf2   :  { %2277 = vmatprep.subr.bf16.mxu0 %v2276_v47 }
  0xf5   :  { %2179 = vmatpush3.bf16.xpose.msra.mxu1 %v2176_v62  ;;  %v519_v62 = vand.u32 4294901760, %v518_v42 }
  0xf6   :  { %2181 = vmatprep.subr.bf16.mxu1 %v2180_v58 }
  0xf7   :  { %v2188_v12 = vpack.c.bf16 %v519_v62, %v512_v20 }
  0xf9   :  { %2279 = vmatpush3.bf16.xpose.msra.mxu0 %v2276_v47  ;;  %v2196_v47 = vpack.c.bf16 %v2741_v4, %v2736_v3  ;;  %v3246_v3 = vld [vmem:[#allocation11_spill] sm:$0xff] }
  0xfa   :  { %2281 = vmatprep.subr.bf16.mxu0 %v2280_v9  ;;  %v3247_v4 = vld [vmem:[#allocation15_spill] sm:$0xff] }
  0xfd   :  { %2183 = vmatpush3.bf16.xpose.msra.mxu1 %v2180_v58 }
  0xfe   :  { %2185 = vmatprep.subr.bf16.mxu1 %v2184_v18 }
 0x101   :  { %2283 = vmatpush3.bf16.xpose.msra.mxu0 %v2280_v9 }
 0x102   :  { %2285 = vmatprep.subr.bf16.mxu0 %v2284_v27 }
 0x105   :  { %2187 = vmatpush3.bf16.xpose.msra.mxu1 %v2184_v18 }
 0x106   :  { %2189 = vmatprep.subr.bf16.mxu1 %v2188_v12 }
 0x109   :  { %2287 = vmatpush3.bf16.xpose.msra.mxu0 %v2284_v27 }
 0x10a   :  { %2289 = vmatprep.subr.bf16.mxu0 %v2635_v22 }
 0x10d   :  { %2191 = vmatpush3.bf16.xpose.msra.mxu1 %v2188_v12 }
 0x10e   :  { %2193 = vmatprep.subr.bf16.mxu1 %v2192_v26 }
 0x110   :  { %2049 = vmatmul.mubr.f32.vlgmr.msra.gmra.mrb[0].mxu0 %v2852_v63 }
 0x111   :  { %2051 = vmatprep.mubr.f32.mxu0 %v2835_v0  ;;  %2291 = vmatpush3.bf16.xpose.msra.mxu0 %v2635_v22  ;;  %v2200_v22 = vpack.c.bf16 %v2767_v10, %v2762_v19  ;;  %v3249_v19 = vld [vmem:[#allocation13_spill] sm:$0xff]  ;;  %v2220_v10 = vpack.c.bf16 %v2815_v53, %v2813_v52  ;;  %v3258_v52 = vld [vmem:[#allocation23_spill] sm:$0xff] }
 0x112   :  { %2293 = vmatprep.subr.bf16.mxu0 %v2641_v23 }
 0x114   :  { %1881 = vmatmul.mubr.f32.vlgmr.msra.gmra.mrb[0].mxu1 %v2852_v63  ;;  %2052 = vmatmul.mubr.f32.gmra.mrb[2].mxu0 %v2856_v57 }
 0x115   :  { %1883 = vmatprep.mubr.f32.mxu1 %v2835_v0  ;;  %2195 = vmatpush3.bf16.xpose.msra.mxu1 %v2192_v26 }
 0x116   :  { %2054 = vmatprep.mubr.f32.mxu0 %v2870_v33  ;;  %2197 = vmatprep.subr.bf16.mxu1 %v2196_v47 }
 0x118   :  { %1884 = vmatmul.mubr.f32.gmra.mrb[2].mxu1 %v2856_v57  ;;  %2055 = vmatmul.mubr.f32.gmra.mrb[4].mxu0 %v2882_v15 }
 0x119   :  { %1886 = vmatprep.mubr.f32.mxu1 %v2870_v33  ;;  %2057 = vmatprep.mubr.f32.mxu0 %v2893_v51 }
 0x11a   :  { %2295 = vmatpush3.bf16.xpose.msra.mxu0 %v2641_v23  ;;  %v2204_v23 = vpack.c.bf16 %v2787_v31, %v2782_v25  ;;  %v3250_v25 = vld [vmem:[#allocation14_spill] sm:$0xff]  ;;  %v3251_v31 = vld [vmem:[#allocation17_spill] sm:$0xff] }
 0x11b   :  { %2297 = vmatprep.subr.bf16.mxu0 %v2675_v36 }
 0x11c   :  { %1887 = vmatmul.mubr.f32.gmra.mrb[4].mxu1 %v2882_v15  ;;  %2058 = vmatmul.mubr.f32.gmra.mrb[6].mxu0 %v2897_v11 }
 0x11d   :  { %1889 = vmatprep.mubr.f32.mxu1 %v2893_v51  ;;  %2199 = vmatpush3.bf16.xpose.msra.mxu1 %v2196_v47 }
 0x11e   :  { %2060 = vmatprep.mubr.f32.mxu0 %v2914_v16  ;;  %2201 = vmatprep.subr.bf16.mxu1 %v2200_v22 }
 0x120   :  { %1890 = vmatmul.mubr.f32.gmra.mrb[6].mxu1 %v2897_v11  ;;  %2061 = vmatmul.mubr.f32.gmra.mrb[8].mxu0 %v2916_v29 }
 0x121   :  { %1892 = vmatprep.mubr.f32.mxu1 %v2914_v16  ;;  %2063 = vmatprep.mubr.f32.mxu0 %v2943_v24 }
 0x122   :  { %2299 = vmatpush3.bf16.xpose.msra.mxu0 %v2675_v36  ;;  %v2208_v36 = vpack.c.bf16 %v2801_v38, %v2798_v37  ;;  %v3252_v37 = vld [vmem:[#allocation16_spill] sm:$0xff]  ;;  %v3253_v38 = vld [vmem:[#allocation18_spill] sm:$0xff] }
 0x123   :  { %2301 = vmatprep.subr.bf16.mxu0 %v2707_v49 }
 0x124   :  { %1893 = vmatmul.mubr.f32.gmra.mrb[8].mxu1 %v2916_v29  ;;  %2064 = vmatmul.mubr.f32.gmra.mrb[10].mxu0 %v2952_v54 }
 0x125   :  { %1895 = vmatprep.mubr.f32.mxu1 %v2943_v24  ;;  %2203 = vmatpush3.bf16.xpose.msra.mxu1 %v2200_v22 }
 0x126   :  { %2066 = vmatprep.mubr.f32.mxu0 %v2965_v41  ;;  %2205 = vmatprep.subr.bf16.mxu1 %v2204_v23 }
 0x128   :  { %1896 = vmatmul.mubr.f32.gmra.mrb[10].mxu1 %v2952_v54  ;;  %2067 = vmatmul.mubr.f32.gmra.mrb[12].mxu0 %v2967_v59 }
 0x129   :  { %1898 = vmatprep.mubr.f32.mxu1 %v2965_v41  ;;  %2069 = vmatprep.mubr.f32.mxu0 %v2985_v1 }
 0x12a   :  { %2303 = vmatpush3.bf16.xpose.msra.mxu0 %v2707_v49  ;;  %v2212_v49 = vpack.c.bf16 %v2807_v44, %v2805_v43  ;;  %v3254_v43 = vld [vmem:[#allocation19_spill] sm:$0xff]  ;;  %v3255_v44 = vld [vmem:[#allocation20_spill] sm:$0xff] }
 0x12b   :  { %2305 = vmatprep.subr.bf16.mxu0 %v3246_v3 }
 0x12c   :  { %1899 = vmatmul.mubr.f32.gmra.mrb[12].mxu1 %v2967_v59  ;;  %2070 = vmatmul.mubr.f32.gmra.mrb[14].mxu0 %v2988_v50 }
 0x12d   :  { %1901 = vmatprep.mubr.f32.mxu1 %v2985_v1  ;;  %2207 = vmatpush3.bf16.xpose.msra.mxu1 %v2204_v23 }
 0x12e   :  { %2104 = vmatprep.mubr.f32.mxu0 %v2831_v6  ;;  %2209 = vmatprep.subr.bf16.mxu1 %v2208_v36 }
 0x130   :  { %1902 = vmatmul.mubr.f32.gmra.mrb[14].mxu1 %v2988_v50 }
 0x131   :  { %1936 = vmatprep.mubr.f32.mxu1 %v3247_v4 }
 0x132   :  { %2307 = vmatpush3.bf16.xpose.msra.mxu0 %v3246_v3 }
 0x133   :  { %2309 = vmatprep.subr.bf16.mxu0 %v3248_v17 }
 0x135   :  { %2211 = vmatpush3.bf16.xpose.msra.mxu1 %v2208_v36 }
 0x136   :  { %2213 = vmatprep.subr.bf16.mxu1 %v2212_v49 }
 0x13a   :  { %2311 = vmatpush3.bf16.xpose.msra.mxu0 %v3248_v17 }
 0x13b   :  { %2313 = vmatprep.subr.bf16.mxu0 %v3249_v19 }
 0x13d   :  { %2215 = vmatpush3.bf16.xpose.msra.mxu1 %v2212_v49 }
 0x13e   :  { %2217 = vmatprep.subr.bf16.mxu1 %v2216_v14 }
 0x142   :  { %2315 = vmatpush3.bf16.xpose.msra.mxu0 %v3249_v19 }
 0x143   :  { %2317 = vmatprep.subr.bf16.mxu0 %v3250_v25 }
 0x145   :  { %2219 = vmatpush3.bf16.xpose.msra.mxu1 %v2216_v14 }
 0x146   :  { %2221 = vmatprep.subr.bf16.mxu1 %v2220_v10 }
 0x14a   :  { %2319 = vmatpush3.bf16.xpose.msra.mxu0 %v3250_v25 }
 0x14d   :  { %2223 = vmatpush3.bf16.xpose.msra.mxu1 %v2220_v10 }
 0x151   :  { %2105 = vmatmul.mubr.f32.vlgmr.msra.gmra.mrb[0].mxu0 %v2852_v63 }
 0x152   :  { %2107 = vmatprep.mubr.f32.mxu0 %v2835_v0 }
 0x154   :  { %1937 = vmatmul.mubr.f32.vlgmr.msra.gmra.mrb[0].mxu1 %v3251_v31 }
 0x155   :  { %2108 = vmatmul.mubr.f32.gmra.mrb[2].mxu0 %v2856_v57  ;;  %1939 = vmatprep.mubr.f32.mxu1 %v3252_v37 }
 0x156   :  { %2110 = vmatprep.mubr.f32.mxu0 %v2870_v33 }
 0x158   :  { %1940 = vmatmul.mubr.f32.gmra.mrb[2].mxu1 %v2865_v2 }
 0x159   :  { %2111 = vmatmul.mubr.f32.gmra.mrb[4].mxu0 %v2882_v15  ;;  %1942 = vmatprep.mubr.f32.mxu1 %v3253_v38 }
 0x15a   :  { %2113 = vmatprep.mubr.f32.mxu0 %v2893_v51 }
 0x15c   :  { %1943 = vmatmul.mubr.f32.gmra.mrb[4].mxu1 %v3254_v43 }
 0x15d   :  { %2114 = vmatmul.mubr.f32.gmra.mrb[6].mxu0 %v2897_v11  ;;  %1945 = vmatprep.mubr.f32.mxu1 %v2902_v56 }
 0x15e   :  { %2116 = vmatprep.mubr.f32.mxu0 %v2914_v16 }
 0x160   :  { %1946 = vmatmul.mubr.f32.gmra.mrb[6].mxu1 %v3255_v44 }
 0x161   :  { %2117 = vmatmul.mubr.f32.gmra.mrb[8].mxu0 %v2916_v29  ;;  %1948 = vmatprep.mubr.f32.mxu1 %v3256_v45 }
 0x162   :  { %2119 = vmatprep.mubr.f32.mxu0 %v2943_v24 }
 0x164   :  { %1949 = vmatmul.mubr.f32.gmra.mrb[8].mxu1 %v3257_v46 }
 0x165   :  { %2120 = vmatmul.mubr.f32.gmra.mrb[10].mxu0 %v2952_v54  ;;  %1951 = vmatprep.mubr.f32.mxu1 %v2950_v5 }
 0x166   :  { %2122 = vmatprep.mubr.f32.mxu0 %v2965_v41 }
 0x168   :  { %1952 = vmatmul.mubr.f32.gmra.mrb[10].mxu1 %v3258_v52 }
 0x169   :  { %2123 = vmatmul.mubr.f32.gmra.mrb[12].mxu0 %v2967_v59  ;;  %1954 = vmatprep.mubr.f32.mxu1 %v2973_v7 }
 0x16a   :  { %2125 = vmatprep.mubr.f32.mxu0 %v2985_v1 }
 0x16c   :  { %1955 = vmatmul.mubr.f32.gmra.mrb[12].mxu1 %v2978_v21 }
 0x16d   :  { %2126 = vmatmul.mubr.f32.gmra.mrb[14].mxu0 %v2988_v50  ;;  %1957 = vmatprep.mubr.f32.mxu1 %v2992_v60 }
 0x170   :  { %1958 = vmatmul.mubr.f32.gmra.mrb[14].mxu1 %v2997_v28 }
 0x224   :  { %v2106_v53 = vpop.f32.mrb[0].mxu0 }
 0x225   :  { %v1360_v6 = vpop.f32.mrb[1].mxu0 }
 0x227   :  { %v1938_v0 = vpop.f32.mrb[0].mxu1 }
 0x228   :  { %v2320_v63 = vadd.f32 %v2106_v53, %v1938_v0  ;;  %v2109_v2 = vpop.f32.mrb[2].mxu0  ;;  %v750_v57 = vpop.f32.mrb[1].mxu1 }
 0x229   :  { %v2321_v33 = vadd.f32 %v1360_v6, %v750_v57  ;;  %v1372_v15 = vpop.f32.mrb[3].mxu0 }
 0x22a   :  { %v3112_v51 = vmax.f32 %v2320_v63, 0.0 }
 0x22b   :  { %v3114_v11 = vmax.f32 %v2321_v33, 0.0  ;;  %v1941_v56 = vpop.f32.mrb[2].mxu1 }
 0x22c   :  { %v2322_v16 = vadd.f32 %v2109_v2, %v1941_v56  ;;  %v2112_v29 = vpop.f32.mrb[4].mxu0  ;;  %v764_v59 = vpop.f32.mrb[3].mxu1  ;;  %v1471_v24 = vmul.f32 %v3112_v51, %v3112_v51 }
 0x22d   :  { %v2323_v5 = vadd.f32 %v1372_v15, %v764_v59  ;;  %v1384_v54 = vpop.f32.mrb[5].mxu0  ;;  %v1470_v41 = vmul.f32 %v3114_v11, %v3114_v11 }
 0x22e   :  { %v3120_v7 = vmax.f32 %v2322_v16, 0.0  ;;  %1488 = vadd.xlane.f32.xlu1 %v1471_v24 }
 0x22f   :  { %v3122_v21 = vmax.f32 %v2323_v5, 0.0  ;;  %1486 = vadd.xlane.f32.xlu0 %v1470_v41  ;;  %v1944_v1 = vpop.f32.mrb[4].mxu1 }
 0x230   :  { %v2115_v50 = vpop.f32.mrb[6].mxu0  ;;  %v2324_v60 = vadd.f32 %v2112_v29, %v1944_v1  ;;  %v778_v28 = vpop.f32.mrb[5].mxu1  ;;  %v1473_v55 = vmul.f32 %v3120_v7, %v3120_v7 }
 0x231   :  { %v2325_v48 = vadd.f32 %v1384_v54, %v778_v28  ;;  %v1396_v34 = vpop.f32.mrb[7].mxu0  ;;  %v1472_v61 = vmul.f32 %v3122_v21, %v3122_v21 }
 0x232   :  { %v3128_v58 = vmax.f32 %v2324_v60, 0.0  ;;  %1492 = vadd.xlane.f32.xlu1 %v1473_v55 }
 0x233   :  { %v3130_v39 = vmax.f32 %v2325_v48, 0.0  ;;  %1490 = vadd.xlane.f32.xlu0 %v1472_v61  ;;  %v1947_v30 = vpop.f32.mrb[6].mxu1 }
 0x234   :  { %v2118_v9 = vpop.f32.mrb[8].mxu0  ;;  %v2326_v35 = vadd.f32 %v2115_v50, %v1947_v30  ;;  %v792_v40 = vpop.f32.mrb[7].mxu1  ;;  %v1475_v13 = vmul.f32 %v3128_v58, %v3128_v58 }
 0x235   :  { %v2327_v32 = vadd.f32 %v1396_v34, %v792_v40  ;;  %v1408_v18 = vpop.f32.mrb[9].mxu0  ;;  %v1474_v8 = vmul.f32 %v3130_v39, %v3130_v39 }
 0x236   :  { %v3136_v42 = vmax.f32 %v2326_v35, 0.0  ;;  %1496 = vadd.xlane.f32.xlu1 %v1475_v13 }
 0x237   :  { %v3138_v27 = vmax.f32 %v2327_v32, 0.0  ;;  %1494 = vadd.xlane.f32.xlu0 %v1474_v8  ;;  %v1950_v20 = vpop.f32.mrb[8].mxu1 }
 0x238   :  { %v2121_v62 = vpop.f32.mrb[10].mxu0  ;;  %v2328_v12 = vadd.f32 %v2118_v9, %v1950_v20  ;;  %v806_v26 = vpop.f32.mrb[9].mxu1  ;;  %v1477_v47 = vmul.f32 %v3136_v42, %v3136_v42 }
 0x239   :  { %v2329_v22 = vadd.f32 %v1408_v18, %v806_v26  ;;  %v1420_v23 = vpop.f32.mrb[11].mxu0  ;;  %v1476_v36 = vmul.f32 %v3138_v27, %v3138_v27 }
 0x23a   :  { %v3144_v3 = vmax.f32 %v2328_v12, 0.0  ;;  %1500 = vadd.xlane.f32.xlu1 %v1477_v47 }
 0x23b   :  { %v3146_v4 = vmax.f32 %v2329_v22, 0.0  ;;  %1498 = vadd.xlane.f32.xlu0 %v1476_v36  ;;  %v1953_v49 = vpop.f32.mrb[10].mxu1 }
 0x23c   :  { %v2124_v17 = vpop.f32.mrb[12].mxu0  ;;  %v2330_v14 = vadd.f32 %v2121_v62, %v1953_v49  ;;  %v820_v19 = vpop.f32.mrb[11].mxu1  ;;  %v1479_v10 = vmul.f32 %v3144_v3, %v3144_v3 }
 0x23d   :  { %v2331_v25 = vadd.f32 %v1420_v23, %v820_v19  ;;  %v1432_v31 = vpop.f32.mrb[13].mxu0  ;;  %v1478_v37 = vmul.f32 %v3146_v4, %v3146_v4 }
 0x23e   :  { %v3152_v38 = vmax.f32 %v2330_v14, 0.0  ;;  %1504 = vadd.xlane.f32.xlu1 %v1479_v10 }
 0x23f   :  { %v3154_v43 = vmax.f32 %v2331_v25, 0.0  ;;  %1502 = vadd.xlane.f32.xlu0 %v1478_v37  ;;  %v1956_v44 = vpop.f32.mrb[12].mxu1 }
 0x240   :  { %v2127_v45 = vpop.f32.mrb[14].mxu0  ;;  %v2332_v46 = vadd.f32 %v2124_v17, %v1956_v44  ;;  %v834_v52 = vpop.f32.mrb[13].mxu1  ;;  %v1481_v53 = vmul.f32 %v3152_v38, %v3152_v38 }
 0x241   :  { %v2333_v6 = vadd.f32 %v1432_v31, %v834_v52  ;;  %v1444_v0 = vpop.f32.mrb[15].mxu0  ;;  %v1480_v63 = vmul.f32 %v3154_v43, %v3154_v43 }
 0x242   :  { %v3160_v2 = vmax.f32 %v2332_v46, 0.0  ;;  %1508 = vadd.xlane.f32.xlu1 %v1481_v53 }
 0x243   :  { %v3162_v57 = vmax.f32 %v2333_v6, 0.0  ;;  %1506 = vadd.xlane.f32.xlu0 %v1480_v63  ;;  %v1959_v33 = vpop.f32.mrb[14].mxu1 }
 0x244   :  { %v2334_v15 = vadd.f32 %v2127_v45, %v1959_v33  ;;  %v848_v56 = vpop.f32.mrb[15].mxu1  ;;  %v1483_v16 = vmul.f32 %v3160_v2, %v3160_v2 }
 0x245   :  { %v2335_v29 = vadd.f32 %v1444_v0, %v848_v56  ;;  %v1482_v59 = vmul.f32 %v3162_v57, %v3162_v57 }
 0x246   :  { %v3168_v24 = vmax.f32 %v2334_v15, 0.0  ;;  %1512 = vadd.xlane.f32.xlu1 %v1483_v16 }
 0x247   :  { %v3170_v5 = vmax.f32 %v2335_v29, 0.0  ;;  %1510 = vadd.xlane.f32.xlu0 %v1482_v59 }
 0x248   :  { %v1485_v54 = vmul.f32 %v3168_v24, %v3168_v24 }
 0x249   :  { %v1484_v41 = vmul.f32 %v3170_v5, %v3170_v5 }
 0x24a   :  { %1516 = vadd.xlane.f32.xlu1 %v1485_v54 }
 0x24b   :  { %1514 = vadd.xlane.f32.xlu0 %v1484_v41 }
 0x2bb   :  { %v1489_v1 = vpop.xlane.xlu1 %1488 }
 0x2bc   :  { %v1519_v50 = vmax.f32 %v1489_v1, 1e-24  ;;  %v1487_v60 = vpop.xlane.xlu0 %1486 }
 0x2bd   :  { %v1518_v28 = vmax.f32 %v1487_v60, 1e-24 }
 0x2be   :  { %2437 = vrsqrt.f32 %v1519_v50 }
 0x2bf   :  { %2439 = vrsqrt.f32 %v1518_v28  ;;  %v1493_v55 = vpop.xlane.xlu1 %1492 }
 0x2c0   :  { %v1521_v48 = vmax.f32 %v1493_v55, 1e-24  ;;  %v1491_v34 = vpop.xlane.xlu0 %1490 }
 0x2c1   :  { %v1520_v61 = vmax.f32 %v1491_v34, 1e-24 }
 0x2c2   :  { %2441 = vrsqrt.f32 %v1521_v48 }
 0x2c3   :  { %2443 = vrsqrt.f32 %v1520_v61  ;;  %v1497_v30 = vpop.xlane.xlu1 %1496 }
 0x2c4   :  { %v1523_v9 = vmax.f32 %v1497_v30, 1e-24  ;;  %v1495_v35 = vpop.xlane.xlu0 %1494 }
 0x2c5   :  { %v1522_v40 = vmax.f32 %v1495_v35, 1e-24 }
 0x2c6   :  { %2445 = vrsqrt.f32 %v1523_v9 }
 0x2c7   :  { %2447 = vrsqrt.f32 %v1522_v40  ;;  %v1501_v13 = vpop.xlane.xlu1 %1500 }
 0x2c8   :  { %v2438_v32 = vpop.eup %2437  ;;  %v1525_v18 = vmax.f32 %v1501_v13, 1e-24  ;;  %v1499_v8 = vpop.xlane.xlu0 %1498 }
 0x2c9   :  { %v2440_v20 = vpop.eup %2439  ;;  %v1551_v62 = vmul.f32 %v2438_v32, %v3112_v51  ;;  %v1524_v12 = vmax.f32 %v1499_v8, 1e-24 }
 0x2ca   :  { %v1550_v26 = vmul.f32 %v2440_v20, %v3114_v11  ;;  %2449 = vrsqrt.f32 %v1525_v18 }
 0x2cb   :  { %1567 = vst [vmem:[#allocation7 + $0x8] sm:$0xff] %v1551_v62  ;;  %2451 = vrsqrt.f32 %v1524_v12  ;;  %v1505_v47 = vpop.xlane.xlu1 %1504 }
 0x2cc   :  { %v2442_v22 = vpop.eup %2441  ;;  %1566 = vst [vmem:[#allocation7] sm:$0xff] %v1550_v26  ;;  %v1527_v23 = vmax.f32 %v1505_v47, 1e-24  ;;  %v1503_v36 = vpop.xlane.xlu0 %1502 }
 0x2cd   :  { %v2444_v49 = vpop.eup %2443  ;;  %v1553_v17 = vmul.f32 %v2442_v22, %v3120_v7  ;;  %v1526_v14 = vmax.f32 %v1503_v36, 1e-24 }
 0x2ce   :  { %v1552_v19 = vmul.f32 %v2444_v49, %v3122_v21  ;;  %2453 = vrsqrt.f32 %v1527_v23 }
 0x2cf   :  { %1569 = vst [vmem:[#allocation7 + $0x18] sm:$0xff] %v1553_v17  ;;  %2455 = vrsqrt.f32 %v1526_v14  ;;  %v1509_v51 = vpop.xlane.xlu1 %1508 }
 0x2d0   :  { %v2446_v10 = vpop.eup %2445  ;;  %1568 = vst [vmem:[#allocation7 + $0x10] sm:$0xff] %v1552_v19  ;;  %v1529_v11 = vmax.f32 %v1509_v51, 1e-24  ;;  %v1507_v25 = vpop.xlane.xlu0 %1506 }
 0x2d1   :  { %v2448_v31 = vpop.eup %2447  ;;  %v1555_v37 = vmul.f32 %v2446_v10, %v3128_v58  ;;  %v1528_v44 = vmax.f32 %v1507_v25, 1e-24 }
 0x2d2   :  { %v1554_v45 = vmul.f32 %v2448_v31, %v3130_v39  ;;  %2457 = vrsqrt.f32 %v1529_v11 }
 0x2d3   :  { %1571 = vst [vmem:[#allocation7 + $0x28] sm:$0xff] %v1555_v37  ;;  %2459 = vrsqrt.f32 %v1528_v44  ;;  %v1513_v7 = vpop.xlane.xlu1 %1512 }
 0x2d4   :  { %v2450_v46 = vpop.eup %2449  ;;  %1570 = vst [vmem:[#allocation7 + $0x20] sm:$0xff] %v1554_v45  ;;  %v1531_v21 = vmax.f32 %v1513_v7, 1e-24  ;;  %v1511_v52 = vpop.xlane.xlu0 %1510 }
 0x2d5   :  { %v2452_v53 = vpop.eup %2451  ;;  %v1557_v6 = vmul.f32 %v2450_v46, %v3136_v42  ;;  %v1530_v0 = vmax.f32 %v1511_v52, 1e-24 }
 0x2d6   :  { %v1556_v63 = vmul.f32 %v2452_v53, %v3138_v27  ;;  %2461 = vrsqrt.f32 %v1531_v21 }
 0x2d7   :  { %1573 = vst [vmem:[#allocation7 + $0x38] sm:$0xff] %v1557_v6  ;;  %2463 = vrsqrt.f32 %v1530_v0  ;;  %v1517_v58 = vpop.xlane.xlu1 %1516 }
 0x2d8   :  { %v2454_v33 = vpop.eup %2453  ;;  %1572 = vst [vmem:[#allocation7 + $0x30] sm:$0xff] %v1556_v63  ;;  %v1533_v39 = vmax.f32 %v1517_v58, 1e-24  ;;  %v1515_v15 = vpop.xlane.xlu0 %1514 }
 0x2d9   :  { %v2456_v56 = vpop.eup %2455  ;;  %v1559_v16 = vmul.f32 %v2454_v33, %v3144_v3  ;;  %v1532_v29 = vmax.f32 %v1515_v15, 1e-24 }
 0x2da   :  { %v1558_v59 = vmul.f32 %v2456_v56, %v3146_v4  ;;  %2465 = vrsqrt.f32 %v1533_v39 }
 0x2db   :  { %1575 = vst [vmem:[#allocation7 + $0x48] sm:$0xff] %v1559_v16  ;;  %2467 = vrsqrt.f32 %v1532_v29 }
 0x2dc   :  { %v2458_v42 = vpop.eup %2457  ;;  %1574 = vst [vmem:[#allocation7 + $0x40] sm:$0xff] %v1558_v59 }
 0x2dd   :  { %v2460_v27 = vpop.eup %2459  ;;  %v1561_v54 = vmul.f32 %v2458_v42, %v3152_v38 }
 0x2de   :  { %v1560_v41 = vmul.f32 %v2460_v27, %v3154_v43 }
 0x2df   :  { %1577 = vst [vmem:[#allocation7 + $0x58] sm:$0xff] %v1561_v54 }
 0x2e0   :  { %v2462_v1 = vpop.eup %2461  ;;  %1576 = vst [vmem:[#allocation7 + $0x50] sm:$0xff] %v1560_v41 }
 0x2e1   :  { %v2464_v50 = vpop.eup %2463  ;;  %v1563_v60 = vmul.f32 %v2462_v1, %v3160_v2 }
 0x2e2   :  { %v1562_v3 = vmul.f32 %v2464_v50, %v3162_v57 }
 0x2e3   :  { %1579 = vst [vmem:[#allocation7 + $0x68] sm:$0xff] %v1563_v60 }
 0x2e4   :  { %v2466_v4 = vpop.eup %2465  ;;  %1578 = vst [vmem:[#allocation7 + $0x60] sm:$0xff] %v1562_v3 }
 0x2e5   :  { %v2468_v28 = vpop.eup %2467  ;;  %v1565_v55 = vmul.f32 %v2466_v4, %v3168_v24 }
 0x2e6   :  { %v1564_v38 = vmul.f32 %v2468_v28, %v3170_v5 }
 0x2e7   :  { %1581 = vst [vmem:[#allocation7 + $0x78] sm:$0xff] %v1565_v55 }
 0x2e8   :  { %1580 = vst [vmem:[#allocation7 + $0x70] sm:$0xff] %v1564_v38 }
 0x2e9   :  { %2524 = shalt.err (!%p2521_p6)
}
 0x2ea   :  { %s2525_s10 = scalar_lea.hbm %s3209_s2, 2048 }
 0x2eb   :  { %p2526_p7 = scmp.ne.s32.totalorder %s3209_s2, %s2525_s10  ;;  %p2529_p8 = scmp.lt.u32.totalorder %s2525_s10, %s3209_s2 }
 0x2ed   :  { %p2531_p9 = pnand %p2529_p8, %p2526_p7 }
 0x2ef   :  { %2534 = shalt.err (!%p2531_p9)
}
 0x2f0   :  { %1593 = dma.vmem_to_hbm [thread:$0]  %s1588_s6, 2048, %s3209_s2, [#allocation4], %s2542_s19, %s2542_s19, %s2543_s20  }
 0x2f1   :  { %2539 = dma.done.wait [#allocation4], 2048  }
 0x2f2   :  { %2540 = vsyncadd [#allocation4], 4294965248 }
 0x2f3   :  { %1597 = vsyncpa [#allocation3], 1 }
 0x2f4   :  { %1598 = vsyncpa [#allocation6], 1 }
 0x2f5   :  { %1599 = vsyncpa [#allocation4], 1 }

</bundles_post_ra>
